<compile_context>
chip_gen: v7x
topology: tpu7x:2x2x1
jax: 0.10.0
libtpu: 0.0.40
codegen_flags: <defaults>
</compile_context>

<pallas_src>
import functools

import jax
import jax.numpy as jnp
from jax.experimental import pallas as pl
from jax.experimental.pallas import tpu as pltpu


def gcn_kernel(x_ref, p_ref, out_ref, *, n_graphs, n_nodes, nin, nhid, nout):
    N, H = n_graphs, n_nodes
    # Packed-parameter row offsets (see pack_gcn_params).
    r_w1 = 0
    r_w2 = r_w1 + nin
    r_adj = r_w2 + nhid
    r_b1 = r_adj + H
    r_b2 = r_b1 + 1

    x = x_ref[...]                                     # (N*H, nin)
    w1 = p_ref[r_w1:r_w1 + nin, 0:nhid]                # (nin, nhid)
    w2 = p_ref[r_w2:r_w2 + nhid, 0:nout]               # (nhid, nout)
    adj = p_ref[r_adj:r_adj + H, 0:H]                  # (H, H)
    b1 = p_ref[r_b1:r_b1 + 1, 0:nhid]                  # (1, nhid)
    b2 = p_ref[r_b2:r_b2 + 1, 0:nout]                  # (1, nout)

    # ---- layer 1: h1 = relu(adj @ (x @ W1) + b1), all graphs at once ----
    s1 = jnp.dot(x, w1, preferred_element_type=jnp.float32)           # (N*H, nhid)
    # Regroup graph-major rows -> node-major rows with graphs concatenated along
    # lanes: (H, N*nhid).  One lane-dense adj matmul replaces N tiny ones (and
    # the old 87.5%-zero block-diagonal adjacency).
    s1t = jnp.concatenate([s1[n * H:(n + 1) * H, :] for n in range(N)], axis=1)
    b1t = jnp.concatenate([b1] * N, axis=1)                            # (1, N*nhid)
    h1 = jnp.maximum(
        jnp.dot(adj, s1t, preferred_element_type=jnp.float32) + b1t, 0.0)
    # TODO(synk): F.dropout is identity in eval mode; training-mode dropout not applied.

    # ---- layer 2: adj @ (h1 @ W2) + b2  ==  (adj @ h1) @ W2 + b2 ----
    # Applying adj first keeps the operand lane-dense (H, N*nhid) and saves a regroup.
    t2 = jnp.dot(adj, h1, preferred_element_type=jnp.float32)          # (H, N*nhid)
    h2 = jnp.concatenate(
        [t2[:, n * nhid:(n + 1) * nhid] for n in range(N)], axis=0)    # (N*H, nhid)
    logits = jnp.dot(h2, w2, preferred_element_type=jnp.float32) + b2  # (N*H, nout)

    # ---- log_softmax over the class dim ----
    m = jnp.max(logits, axis=-1, keepdims=True)
    z = logits - m
    lse = jnp.log(jnp.sum(jnp.exp(z), axis=-1, keepdims=True))
    lsm = z - lse                                                      # (N*H, nout)

    # Lane-dense output slab (H, N*nout) -> full unmasked 128-lane stores.
    out_ref[...] = jnp.concatenate(
        [lsm[n * H:(n + 1) * H, :] for n in range(N)], axis=1).astype(out_ref.dtype)


def pack_gcn_params(adj, params):
    """One-time prep (hoisted out of the per-call hot path): pack adj, weights
    and biases into one small lane-width-32 buffer -> a single parameter DMA."""
    w1, b1, w2, b2 = params
    nin, nhid = w1.shape
    nout = w2.shape[1]
    H = adj.shape[0]
    width = max(nin, nhid, nout, H)

    def pad_w(a):
        a = a.astype(jnp.float32)
        return jnp.pad(a, ((0, 0), (0, width - a.shape[1])))

    packed = jnp.concatenate([
        pad_w(w1),                     # rows [0, nin)
        pad_w(w2),                     # rows [nin, nin + nhid)
        pad_w(adj),                    # rows [nin + nhid, nin + nhid + H)
        pad_w(b1.reshape(1, nhid)),    # row  nin + nhid + H
        pad_w(b2.reshape(1, nout)),    # row  nin + nhid + H + 1
    ], axis=0)
    dims = (int(H), int(nin), int(nhid), int(nout))
    return packed, dims


@functools.partial(jax.jit, static_argnums=2)
def gcn_forward(x, packed, dims):
    """x: (B, L, H, W) f32, packed/dims from pack_gcn_params. -> (B, L, H, nout)."""
    H, nin, nhid, nout = dims
    B, L, Hx, W = x.shape
    assert Hx == H and W == nin
    # The PyTorch module reshapes the output back to (B, L, H, W) => nout == W.
    assert nout == W, "GCN spec assumes nout == nin (output reshaped to x's shape)"
    N = B * L

    x2 = x.reshape(N * H, nin)         # contiguous (free) reshape

    kernel = functools.partial(gcn_kernel, n_graphs=N, n_nodes=H,
                               nin=nin, nhid=nhid, nout=nout)
    out = pl.pallas_call(
        kernel,
        out_shape=jax.ShapeDtypeStruct((H, N * nout), jnp.float32),
        in_specs=[
            pl.BlockSpec(memory_space=pltpu.MemorySpace.VMEM),
            pl.BlockSpec(memory_space=pltpu.MemorySpace.VMEM),
        ],
        out_specs=pl.BlockSpec(memory_space=pltpu.MemorySpace.VMEM),
    )(x2, packed)

    # (H, N*nout) -> (N, H, nout) -> (B, L, H, nout): tiny wrapper-side permute.
    out = out.reshape(H, N, nout).transpose(1, 0, 2).reshape(B, L, H, nout)
    return out


def _reference(x, adj, params):
    """Pure-JAX mirror of the PyTorch GCN.forward (inference mode)."""
    B, L, H, W = x.shape
    w1, b1, w2, b2 = params
    xs = x.reshape(B * L, H, W)
    s1 = jnp.einsum('nhw,wk->nhk', xs, w1)
    h1 = jax.nn.relu(jnp.einsum('ij,njk->nik', adj, s1) + b1)
    s2 = jnp.einsum('nhk,ko->nho', h1, w2)
    out = jnp.einsum('ij,njo->nio', adj, s2) + b2
    out = out.reshape(B, L, H, w2.shape[1])
    return jax.nn.log_softmax(out, axis=-1)


def init_params(key, nin, nhid, nout):
    k1, k2, k3, k4 = jax.random.split(key, 4)
    s1 = 1.0 / jnp.sqrt(nhid)
    s2 = 1.0 / jnp.sqrt(nout)
    w1 = jax.random.uniform(k1, (nin, nhid), jnp.float32, -s1, s1)
    b1 = jax.random.uniform(k2, (nhid,), jnp.float32, -s1, s1)
    w2 = jax.random.uniform(k3, (nhid, nout), jnp.float32, -s2, s2)
    b2 = jax.random.uniform(k4, (nout,), jnp.float32, -s2, s2)
    return (w1, b1, w2, b2)


if __name__ == "__main__":
    key = jax.random.PRNGKey(0)
    k_x, k_a, k_p = jax.random.split(key, 3)

    # B*L graphs of H nodes with W=nin features; module implies nout == W.
    B, L, H, W = 2, 4, 16, 16
    nhid = 32

    x = jax.random.normal(k_x, (B, L, H, W), jnp.float32)
    a_raw = jax.random.uniform(k_a, (H, H), jnp.float32) + jnp.eye(H, dtype=jnp.float32)
    adj = a_raw / a_raw.sum(axis=1, keepdims=True)      # row-normalized adjacency
    params = init_params(k_p, W, nhid, W)

    # One-time parameter packing, hoisted out of the forward hot path.
    packed, dims = pack_gcn_params(adj, params)
    packed = jax.block_until_ready(packed)

    out = gcn_forward(x, packed, dims)
    out = jax.block_until_ready(out)

    ref = _reference(x, adj, params)
    assert out.shape == (B, L, H, W)
    assert jnp.allclose(out, ref, atol=1e-4, rtol=1e-4)

    print("KERNEL_OK")
</pallas_src>

<mosaic_0001>
module attributes {stable_mosaic.version = 11 : i64} {
  func.func @gcn_kernel(%arg0: memref<128x16xf32, #tpu.memory_space<vmem>>, %arg1: memref<66x32xf32, #tpu.memory_space<vmem>>, %arg2: memref<16x128xf32, #tpu.memory_space<vmem>>) attributes {dimension_semantics = [], scalar_prefetch = 0 : i64, scratch_operands = 0 : i64, tpu.core_type = #tpu.core_type<tc>} {
    %c0 = arith.constant 0 : index
    %c0_0 = arith.constant 0 : index
    %0 = vector.load %arg0[%c0, %c0_0] : memref<128x16xf32, #tpu.memory_space<vmem>>, vector<128x16xf32>
    %c0_1 = arith.constant 0 : index
    %c0_2 = arith.constant 0 : index
    %1 = vector.load %arg1[%c0_1, %c0_2] : memref<66x32xf32, #tpu.memory_space<vmem>>, vector<16x32xf32>
    %c16 = arith.constant 16 : index
    %c0_3 = arith.constant 0 : index
    %2 = vector.load %arg1[%c16, %c0_3] : memref<66x32xf32, #tpu.memory_space<vmem>>, vector<32x16xf32>
    %c48 = arith.constant 48 : index
    %c0_4 = arith.constant 0 : index
    %3 = vector.load %arg1[%c48, %c0_4] : memref<66x32xf32, #tpu.memory_space<vmem>>, vector<16x16xf32>
    %c64 = arith.constant 64 : index
    %c0_5 = arith.constant 0 : index
    %4 = vector.load %arg1[%c64, %c0_5] : memref<66x32xf32, #tpu.memory_space<vmem>>, vector<1x32xf32>
    %c65 = arith.constant 65 : index
    %c0_6 = arith.constant 0 : index
    %5 = vector.load %arg1[%c65, %c0_6] : memref<66x32xf32, #tpu.memory_space<vmem>>, vector<1x16xf32>
    %cst = arith.constant dense<0.000000e+00> : vector<128x32xf32>
    %6 = tpu.matmul %0, %1, %cst {dimension_numbers = #tpu.dot_dimension_numbers<[1], [0], [0], [1], [0, 0, 1, 1], [], []>} : vector<128x16xf32>, vector<16x32xf32>, vector<128x32xf32> -> vector<128x32xf32>
    %7 = vector.extract_strided_slice %6 {offsets = [0, 0], sizes = [16, 32], strides = [1, 1]} : vector<128x32xf32> to vector<16x32xf32>
    %8 = vector.extract_strided_slice %6 {offsets = [16, 0], sizes = [16, 32], strides = [1, 1]} : vector<128x32xf32> to vector<16x32xf32>
    %9 = vector.extract_strided_slice %6 {offsets = [32, 0], sizes = [16, 32], strides = [1, 1]} : vector<128x32xf32> to vector<16x32xf32>
    %10 = vector.extract_strided_slice %6 {offsets = [48, 0], sizes = [16, 32], strides = [1, 1]} : vector<128x32xf32> to vector<16x32xf32>
    %11 = vector.extract_strided_slice %6 {offsets = [64, 0], sizes = [16, 32], strides = [1, 1]} : vector<128x32xf32> to vector<16x32xf32>
    %12 = vector.extract_strided_slice %6 {offsets = [80, 0], sizes = [16, 32], strides = [1, 1]} : vector<128x32xf32> to vector<16x32xf32>
    %13 = vector.extract_strided_slice %6 {offsets = [96, 0], sizes = [16, 32], strides = [1, 1]} : vector<128x32xf32> to vector<16x32xf32>
    %14 = vector.extract_strided_slice %6 {offsets = [112, 0], sizes = [16, 32], strides = [1, 1]} : vector<128x32xf32> to vector<16x32xf32>
    %15 = tpu.concatenate %7, %8, %9, %10, %11, %12, %13, %14 in 1 : vector<16x32xf32>, vector<16x32xf32>, vector<16x32xf32>, vector<16x32xf32>, vector<16x32xf32>, vector<16x32xf32>, vector<16x32xf32>, vector<16x32xf32> -> vector<16x256xf32>
    %16 = tpu.concatenate %4, %4, %4, %4, %4, %4, %4, %4 in 1 : vector<1x32xf32>, vector<1x32xf32>, vector<1x32xf32>, vector<1x32xf32>, vector<1x32xf32>, vector<1x32xf32>, vector<1x32xf32>, vector<1x32xf32> -> vector<1x256xf32>
    %cst_7 = arith.constant dense<0.000000e+00> : vector<16x256xf32>
    %17 = tpu.matmul %3, %15, %cst_7 {dimension_numbers = #tpu.dot_dimension_numbers<[1], [0], [0], [1], [0, 0, 1, 1], [], []>} : vector<16x16xf32>, vector<16x256xf32>, vector<16x256xf32> -> vector<16x256xf32>
    %18 = vector.broadcast %16 : vector<1x256xf32> to vector<16x256xf32>
    %19 = arith.addf %17, %18 : vector<16x256xf32>
    %cst_8 = arith.constant 0.000000e+00 : f32
    %20 = vector.broadcast %cst_8 : f32 to vector<16x256xf32>
    %21 = arith.maximumf %19, %20 : vector<16x256xf32>
    %cst_9 = arith.constant dense<0.000000e+00> : vector<16x256xf32>
    %22 = tpu.matmul %3, %21, %cst_9 {dimension_numbers = #tpu.dot_dimension_numbers<[1], [0], [0], [1], [0, 0, 1, 1], [], []>} : vector<16x16xf32>, vector<16x256xf32>, vector<16x256xf32> -> vector<16x256xf32>
    %23 = vector.extract_strided_slice %22 {offsets = [0, 0], sizes = [16, 32], strides = [1, 1]} : vector<16x256xf32> to vector<16x32xf32>
    %24 = vector.extract_strided_slice %22 {offsets = [0, 32], sizes = [16, 32], strides = [1, 1]} : vector<16x256xf32> to vector<16x32xf32>
    %25 = vector.extract_strided_slice %22 {offsets = [0, 64], sizes = [16, 32], strides = [1, 1]} : vector<16x256xf32> to vector<16x32xf32>
    %26 = vector.extract_strided_slice %22 {offsets = [0, 96], sizes = [16, 32], strides = [1, 1]} : vector<16x256xf32> to vector<16x32xf32>
    %27 = vector.extract_strided_slice %22 {offsets = [0, 128], sizes = [16, 32], strides = [1, 1]} : vector<16x256xf32> to vector<16x32xf32>
    %28 = vector.extract_strided_slice %22 {offsets = [0, 160], sizes = [16, 32], strides = [1, 1]} : vector<16x256xf32> to vector<16x32xf32>
    %29 = vector.extract_strided_slice %22 {offsets = [0, 192], sizes = [16, 32], strides = [1, 1]} : vector<16x256xf32> to vector<16x32xf32>
    %30 = vector.extract_strided_slice %22 {offsets = [0, 224], sizes = [16, 32], strides = [1, 1]} : vector<16x256xf32> to vector<16x32xf32>
    %31 = tpu.concatenate %23, %24, %25, %26, %27, %28, %29, %30 in 0 : vector<16x32xf32>, vector<16x32xf32>, vector<16x32xf32>, vector<16x32xf32>, vector<16x32xf32>, vector<16x32xf32>, vector<16x32xf32>, vector<16x32xf32> -> vector<128x32xf32>
    %cst_10 = arith.constant dense<0.000000e+00> : vector<128x16xf32>
    %32 = tpu.matmul %31, %2, %cst_10 {dimension_numbers = #tpu.dot_dimension_numbers<[1], [0], [0], [1], [0, 0, 1, 1], [], []>} : vector<128x32xf32>, vector<32x16xf32>, vector<128x16xf32> -> vector<128x16xf32>
    %33 = vector.broadcast %5 : vector<1x16xf32> to vector<128x16xf32>
    %34 = arith.addf %32, %33 : vector<128x16xf32>
    %cst_11 = arith.constant dense<0xFF800000> : vector<128xf32>
    %35 = vector.multi_reduction <maximumf>, %34, %cst_11 [1] : vector<128x16xf32> to vector<128xf32>
    %36 = vector.shape_cast %35 : vector<128xf32> to vector<128x1xf32>
    %37 = vector.broadcast %36 : vector<128x1xf32> to vector<128x16xf32>
    %38 = arith.subf %34, %37 : vector<128x16xf32>
    %39 = math.exp %38 : vector<128x16xf32>
    %cst_12 = arith.constant dense<0.000000e+00> : vector<128xf32>
    %40 = vector.multi_reduction <add>, %39, %cst_12 [1] : vector<128x16xf32> to vector<128xf32>
    %41 = vector.shape_cast %40 : vector<128xf32> to vector<128x1xf32>
    %42 = math.log %41 : vector<128x1xf32>
    %43 = vector.broadcast %42 : vector<128x1xf32> to vector<128x16xf32>
    %44 = arith.subf %38, %43 : vector<128x16xf32>
    %45 = vector.extract_strided_slice %44 {offsets = [0, 0], sizes = [16, 16], strides = [1, 1]} : vector<128x16xf32> to vector<16x16xf32>
    %46 = vector.extract_strided_slice %44 {offsets = [16, 0], sizes = [16, 16], strides = [1, 1]} : vector<128x16xf32> to vector<16x16xf32>
    %47 = vector.extract_strided_slice %44 {offsets = [32, 0], sizes = [16, 16], strides = [1, 1]} : vector<128x16xf32> to vector<16x16xf32>
    %48 = vector.extract_strided_slice %44 {offsets = [48, 0], sizes = [16, 16], strides = [1, 1]} : vector<128x16xf32> to vector<16x16xf32>
    %49 = vector.extract_strided_slice %44 {offsets = [64, 0], sizes = [16, 16], strides = [1, 1]} : vector<128x16xf32> to vector<16x16xf32>
    %50 = vector.extract_strided_slice %44 {offsets = [80, 0], sizes = [16, 16], strides = [1, 1]} : vector<128x16xf32> to vector<16x16xf32>
    %51 = vector.extract_strided_slice %44 {offsets = [96, 0], sizes = [16, 16], strides = [1, 1]} : vector<128x16xf32> to vector<16x16xf32>
    %52 = vector.extract_strided_slice %44 {offsets = [112, 0], sizes = [16, 16], strides = [1, 1]} : vector<128x16xf32> to vector<16x16xf32>
    %53 = tpu.concatenate %45, %46, %47, %48, %49, %50, %51, %52 in 1 : vector<16x16xf32>, vector<16x16xf32>, vector<16x16xf32>, vector<16x16xf32>, vector<16x16xf32>, vector<16x16xf32>, vector<16x16xf32>, vector<16x16xf32> -> vector<16x128xf32>
    %c0_13 = arith.constant 0 : index
    %c0_14 = arith.constant 0 : index
    %54 = vector.load %arg2[%c0_13, %c0_14] : memref<16x128xf32, #tpu.memory_space<vmem>>, vector<16x128xf32>
    tpu.vector_store %arg2[%c0_13, %c0_14], %53 {strides = array<i32>} : memref<16x128xf32, #tpu.memory_space<vmem>>, vector<16x128xf32>,
    return
  }
}

</mosaic_0001>

<bundles_post_ra>
// kernel: gcn_forward.1
= control target key start
LH: loop header
LB: loop body
LE: loop exit
PB: predicated region body
PF: predicated region fallthrough
CT: control target
= control target key end

     0   :  { %7 = vsyncpa [#allocation3], 0  ;;  %s1254_s9 = smov [#allocation2]   ;;  %s1558_s0 = inlined_call_operand.hbm [shape: f32[128,16], index: 0, kind: input, shape index: {}]   ;;  %s1559_s1 = inlined_call_operand.vmem [shape: f32[66,32], index: 1, kind: input, shape index: {}]   ;;  %s1560_s2 = inlined_call_operand.vmem [shape: f32[16,128], index: 2, kind: output, shape index: {}]  }
   0x1   :  { %s13_s10 = sshll.u32 %s1254_s9, 4  ;;  %s1230_s13 = scalar_lea.hbm %s1558_s0, 2048  ;;  %s14_s10 = int_to_ptr.vmem [resolvable:$true] %s13_s10 }
   0x2   :  { %p1231_p0 = scmp.ne.s32.totalorder %s1558_s0, %s1230_s13  ;;  %p1234_p1 = scmp.lt.u32.totalorder %s1230_s13, %s1558_s0 }
   0x4   :  { %p1236_p2 = pnand %p1234_p1, %p1231_p0 }
   0x6   :  { %1239 = shalt.err (!%p1236_p2)
}
   0x7   :  { %s1240_s18 = scalar_lea.vmem %s14_s10, 2048  ;;  %p1245_p4 = scmp.lt.s32.totalorder %s14_s10, %s14_s10 }
   0x8   :  { %p1241_p3 = scmp.ne.s32.totalorder %s14_s10, %s1240_s18  ;;  %p1246_p5 = scmp.lt.s32.totalorder %s1240_s18, %s1240_s18 }
   0xa   :  { %p1247_p6 = por %p1246_p5, %p1245_p4 }
   0xc   :  { %p1248_p7 = pnand %p1247_p6, %p1241_p3 }
   0xe   :  { %1251 = shalt.err (!%p1248_p7)
}
   0xf   :  { %s1255_s19 = smov 128   ;;  %s1256_s20 = smov 8  }
  0x10   :  { %19 = dma.hbm_to_vmem [thread:$0]  %s1558_s0, 2048, %s14_s10, [#allocation3], %s1255_s19, %s1255_s19, %s1256_s20  }
  0x11   :  { %1252 = dma.done.wait [#allocation3], 2048  }
  0x12   :  { %1253 = vsyncadd [#allocation3], 4294965248  ;;  %vm51_vm0 = vcmask 130048   ;;  %v41_v0 = vld [vmem:[%s1559_s1] sm:$0xff]  ;;  %v42_v1 = vld [vmem:[%s1559_s1 + $0x8] sm:$0xff]  ;;  %s1257_s0 = smov 32  }
  0x13   :  { %v25_v2 = vld [vmem:[#allocation2] sm:$0xff]  ;;  %v1105_v3 = vpack.c.bf16 %v42_v1, %v41_v0  ;;  %v26_v4 = vld [vmem:[#allocation2 + $0x8] sm:$0xff]  ;;  %v27_v5 = vld [vmem:[#allocation2 + $0x10] sm:$0xff]  ;;  %s1258_s27 = smov 64   ;;  %v1259_v38 = vmov 0.0   ;;  %s1260_s28 = smov 96  }
  0x14   :  { %1049 = vmatprep.mubr.msk.f32.mxu0 %vm51_vm0, %v25_v2  ;;  %v28_v6 = vld [vmem:[#allocation2 + $0x18] sm:$0xff]  ;;  %v29_v7 = vld [vmem:[#allocation2 + $0x20] sm:$0xff]  ;;  %v30_v8 = vld [vmem:[#allocation2 + $0x28] sm:$0xff]  ;;  %476 = vmatprep.mubr.f32.mxu1 %v1259_v38  ;;  %vm293_vm1 = vcmask 261120   ;;  %vm296_vm2 = vcmask 523264   ;;  %vm299_vm3 = vcmask 785408  }
  0x15   :  { %1106 = vmatprep.subr.bf16.mxu0 %v1105_v3  ;;  %v31_v9 = vld [vmem:[#allocation2 + $0x30] sm:$0xff]  ;;  %v32_v10 = vld [vmem:[#allocation2 + $0x38] sm:$0xff]  ;;  %v33_v11 = vld [vmem:[#allocation2 + $0x40] sm:$0xff]  ;;  %s1262_s17 = smov 48   ;;  %s1263_s18 = smov 80   ;;  %vm950_vm4 = vcmask 392192  }
  0x16   :  { %1108 = vmatpush3.bf16.msra.mxu0 %v1105_v3  ;;  %v34_v12 = vld [vmem:[#allocation2 + $0x48] sm:$0xff]  ;;  %v35_v13 = vld [vmem:[#allocation2 + $0x50] sm:$0xff]  ;;  %v36_v14 = vld [vmem:[#allocation2 + $0x58] sm:$0xff]  ;;  %s1264_s19 = smov 112   ;;  %vm955_vm5 = vcmask 654336   ;;  %vm960_vm6 = vcmask 916480  }
  0x17   :  { %v37_v15 = vld [vmem:[#allocation2 + $0x60] sm:$0xff]  ;;  %v38_v16 = vld [vmem:[#allocation2 + $0x68] sm:$0xff]  ;;  %v39_v17 = vld [vmem:[#allocation2 + $0x70] sm:$0xff] }
  0x18   :  { %v40_v18 = vld [vmem:[#allocation2 + $0x78] sm:$0xff]  ;;  %v49_v42 = vld [vmem:[%s1559_s1 + $0x40] sm:$0x1] }
  0x19   :  { %1050 = vmatmul.mubr.msk.f32.vlgmr.msra.gmra.mrb[0].mxu0 %vm51_vm0, %v26_v4 }
  0x1a   :  { %1052 = vmatprep.mubr.msk.f32.mxu0 %vm51_vm0, %v27_v5 }
  0x1d   :  { %1053 = vmatmul.mubr.msk.f32.gmra.mrb[2].mxu0 %vm51_vm0, %v28_v6 }
  0x1e   :  { %1055 = vmatprep.mubr.msk.f32.mxu0 %vm51_vm0, %v29_v7 }
  0x21   :  { %1056 = vmatmul.mubr.msk.f32.gmra.mrb[4].mxu0 %vm51_vm0, %v30_v8 }
  0x22   :  { %1058 = vmatprep.mubr.msk.f32.mxu0 %vm51_vm0, %v31_v9 }
  0x25   :  { %1059 = vmatmul.mubr.msk.f32.gmra.mrb[6].mxu0 %vm51_vm0, %v32_v10 }
  0x26   :  { %1061 = vmatprep.mubr.msk.f32.mxu0 %vm51_vm0, %v33_v11  ;;  %v47_v11 = vld [vmem:[%s1559_s1 + $0x30] sm:$0xff] }
  0x29   :  { %1062 = vmatmul.mubr.msk.f32.gmra.mrb[8].mxu0 %vm51_vm0, %v34_v12  ;;  %v48_v12 = vld [vmem:[%s1559_s1 + $0x38] sm:$0xff] }
  0x2a   :  { %1064 = vmatprep.mubr.msk.f32.mxu0 %vm51_vm0, %v35_v13 }
  0x2d   :  { %1065 = vmatmul.mubr.msk.f32.gmra.mrb[10].mxu0 %vm51_vm0, %v36_v14  ;;  %v321_v14 = vlaneseq }
  0x2e   :  { %1067 = vmatprep.mubr.msk.f32.mxu0 %vm51_vm0, %v37_v15 }
  0x31   :  { %1068 = vmatmul.mubr.msk.f32.gmra.mrb[12].mxu0 %vm51_vm0, %v38_v16 }
  0x32   :  { %1070 = vmatprep.mubr.msk.f32.mxu0 %vm51_vm0, %v39_v17  ;;  %v322_v17 = vshrl.u32 %v321_v14, 7 }
  0x35   :  { %1071 = vmatmul.mubr.msk.f32.gmra.mrb[14].mxu0 %vm51_vm0, %v40_v18 }
  0x36   :  { %395 = vmatprep.mubr.f32.mxu0 %v1259_v38 }
  0xec   :  { %v1051_v19 = vpop.f32.mrb[0].mxu0 }
  0xed   :  { %v166_v20 = vpop.f32.mrb[1].mxu0 }
  0xf0   :  { %v1054_v21 = vpop.f32.mrb[2].mxu0 }
  0xf1   :  { %v176_v22 = vpop.f32.mrb[3].mxu0 }
  0xf2   :  { %v1136_v23 = vpack.i.bf16 %v1054_v21, %v176_v22 }
  0xf4   :  { %1137 = vrot.lane.b32.xlu0 %v1136_v23, %s1257_s0  ;;  %v1057_v24 = vpop.f32.mrb[4].mxu0 }
  0xf5   :  { %v186_v25 = vpop.f32.mrb[5].mxu0 }
  0xf6   :  { %v1141_v26 = vpack.i.bf16 %v1057_v24, %v186_v25 }
  0xf8   :  { %1142 = vrot.lane.b32.xlu1 %v1141_v26, %s1258_s27  ;;  %v1060_v27 = vpop.f32.mrb[6].mxu0 }
  0xf9   :  { %v196_v28 = vpop.f32.mrb[7].mxu0 }
  0xfa   :  { %v1161_v29 = vpack.i.bf16 %v1060_v27, %v196_v28 }
  0xfc   :  { %v1063_v30 = vpop.f32.mrb[8].mxu0 }
  0xfd   :  { %v206_v31 = vpop.f32.mrb[9].mxu0 }
 0x100   :  { %v1066_v32 = vpop.f32.mrb[10].mxu0 }
 0x101   :  { %v216_v33 = vpop.f32.mrb[11].mxu0 }
 0x102   :  { %v1146_v34 = vpack.i.bf16 %v1066_v32, %v216_v33 }
 0x104   :  { %1147 = vrot.lane.b32.xlu0 %v1146_v34, %s1257_s0  ;;  %v1069_v35 = vpop.f32.mrb[12].mxu0 }
 0x105   :  { %v226_v36 = vpop.f32.mrb[13].mxu0 }
 0x106   :  { %v1151_v37 = vpack.i.bf16 %v1069_v35, %v226_v36 }
 0x108   :  { %1152 = vrot.lane.b32.xlu1 %v1151_v37, %s1258_s27  ;;  %v1072_v39 = vpop.f32.mrb[14].mxu0  ;;  %v43_v37 = vld [vmem:[%s1559_s1 + $0x10] sm:$0xff] }
 0x109   :  { %v236_v40 = vpop.f32.mrb[15].mxu0 }
 0x10a   :  { %v1156_v41 = vpack.i.bf16 %v1072_v39, %v236_v40  ;;  %v44_v39 = vld [vmem:[%s1559_s1 + $0x18] sm:$0xff] }
 0x10b   :  { %v1117_v40 = vpack.c.bf16 %v44_v39, %v43_v37 }
 0x10c   :  { %1162 = vrot.lane.b32.xlu1 %v1161_v29, %s1260_s28  ;;  %1157 = vrot.lane.b32.xlu0 %v1156_v41, %s1260_s28  ;;  %v45_v41 = vld [vmem:[%s1559_s1 + $0x20] sm:$0xff] }
 0x110   :  { %309 = vrot.lane.b32.xlu0 %v49_v42, %s1257_s0  ;;  %312 = vrot.lane.b32.xlu1 %v49_v42, %s1258_s27 }
 0x114   :  { %315 = vrot.lane.b32.xlu0 %v49_v42, %s1260_s28 }
 0x166   :  { %v1138_v43 = vpop.permute.xlu0 %1137 }
 0x167   :  { %v1140_v46 = vunpack.i.h.bf16 %v1138_v43  ;;  %v1139_v47 = vunpack.i.l.bf16 %v1138_v43 }
 0x169   :  { %v295_v55 = vsel %vm293_vm1, %v1051_v19, %v1140_v46  ;;  %v294_v56 = vsel %vm293_vm1, %v166_v20, %v1139_v47  ;;  %v323_v20 = vsub.s32 0, %v322_v17 }
 0x16a   :  { %v1143_v44 = vpop.permute.xlu1 %1142 }
 0x16b   :  { %v1145_v51 = vunpack.i.h.bf16 %v1143_v44  ;;  %v1144_v52 = vunpack.i.l.bf16 %v1143_v44 }
 0x16d   :  { %v298_v1 = vsel %vm296_vm2, %v295_v55, %v1145_v51  ;;  %v297_v2 = vsel %vm296_vm2, %v294_v56, %v1144_v52 }
 0x176   :  { %v1148_v45 = vpop.permute.xlu0 %1147 }
 0x177   :  { %v1150_v48 = vunpack.i.h.bf16 %v1148_v45  ;;  %v1149_v49 = vunpack.i.l.bf16 %v1148_v45 }
 0x179   :  { %v303_v57 = vsel %vm293_vm1, %v1063_v30, %v1150_v48  ;;  %v302_v58 = vsel %vm293_vm1, %v206_v31, %v1149_v49 }
 0x17a   :  { %v1153_v50 = vpop.permute.xlu1 %1152 }
 0x17b   :  { %v1155_v53 = vunpack.i.h.bf16 %v1153_v50  ;;  %v1154_v54 = vunpack.i.l.bf16 %v1153_v50 }
 0x17d   :  { %v305_v3 = vsel %vm296_vm2, %v303_v57, %v1155_v53  ;;  %v304_v4 = vsel %vm296_vm2, %v302_v58, %v1154_v54 }
 0x17e   :  { %v1163_v59 = vpop.permute.xlu1 %1162  ;;  %v1158_v60 = vpop.permute.xlu0 %1157 }
 0x17f   :  { %v1165_v61 = vunpack.i.h.bf16 %v1163_v59  ;;  %v1164_v62 = vunpack.i.l.bf16 %v1163_v59  ;;  %v1160_v63 = vunpack.i.h.bf16 %v1158_v60  ;;  %v1159_v0 = vunpack.i.l.bf16 %v1158_v60 }
 0x181   :  { %v301_v5 = vsel %vm299_vm3, %v298_v1, %v1165_v61  ;;  %v300_v6 = vsel %vm299_vm3, %v297_v2, %v1164_v62  ;;  %v306_v7 = vsel %vm299_vm3, %v304_v4, %v1159_v0  ;;  %v307_v8 = vsel %vm299_vm3, %v305_v3, %v1160_v63  ;;  %v990_v61 = vld [vmem:[%s1559_s1 + $0x41] ss:$0 sm:$0xff] }
 0x182   :  { %v1111_v9 = vpack.c.bf16 %v301_v5, %v300_v6  ;;  %v1109_v10 = vpack.c.bf16 %v307_v8, %v306_v7  ;;  %v310_v13 = vpop.permute.xlu0 %309  ;;  %v313_v16 = vpop.permute.xlu1 %312 }
 0x183   :  { %v318_v15 = vsel %vm293_vm1, %v49_v42, %v310_v13 }
 0x184   :  { %1110 = vmatprep.subr.bf16.mxu0 %v1109_v10  ;;  %v319_v18 = vsel %vm296_vm2, %v318_v15, %v313_v16 }
 0x185   :  { %1112 = vmatpush1.bf16.msra.mxu0 %v1111_v9 }
 0x186   :  { %v316_v19 = vpop.permute.xlu0 %315 }
 0x187   :  { %v320_v21 = vsel %vm299_vm3, %v319_v18, %v316_v19 }
 0x188   :  { %986 = vmatmul.mubr.msk.f32.vlgmr.msra.gmra.mrb[16].mxu0 %vm51_vm0, %v47_v11  ;;  %v324_v22 = vrot.slane %v320_v21, %v323_v20 }
 0x189   :  { %401 = vmatprep.mubr.f32.mxu0 %v1259_v38 }
 0x18c   :  { %987 = vmatmul.mubr.msk.f32.gmra.mrb[18].mxu0 %vm51_vm0, %v48_v12 }
 0x25b   :  { %v397_v23 = vpop.f32.mrb[16].mxu0 }
 0x25c   :  { %v399_v24 = vpop.f32.mrb[17].mxu0  ;;  %v398_v25 = vadd.f32 %v397_v23, %v324_v22 }
 0x25d   :  { %v400_v26 = vadd.f32 %v399_v24, %v324_v22 }
 0x25e   :  { %v408_v31 = vmax.f32 %v398_v25, 0.0 }
 0x25f   :  { %v403_v27 = vpop.f32.mrb[18].mxu0  ;;  %v409_v33 = vmax.f32 %v400_v26, 0.0 }
 0x260   :  { %v404_v28 = vadd.f32 %v403_v27, %v324_v22  ;;  %v405_v29 = vpop.f32.mrb[19].mxu0 }
 0x261   :  { %v406_v30 = vadd.f32 %v405_v29, %v324_v22 }
 0x262   :  { %v410_v32 = vmax.f32 %v404_v28, 0.0 }
 0x263   :  { %v411_v34 = vmax.f32 %v406_v30, 0.0 }
 0x264   :  { %v1115_v35 = vpack.c.bf16 %v410_v32, %v408_v31 }
 0x265   :  { %v1113_v36 = vpack.c.bf16 %v411_v34, %v409_v33 }
 0x267   :  { %1114 = vmatprep.subr.bf16.mxu1 %v1113_v36 }
 0x268   :  { %1116 = vmatpush1.bf16.msra.mxu1 %v1115_v35 }
 0x269   :  { %1118 = vmatprep.subr.bf16.mxu1 %v1117_v40 }
 0x26b   :  { %988 = vmatmul.mubr.msk.f32.vlgmr.msra.gmra.mrb[0].mxu1 %vm51_vm0, %v47_v11 }
 0x26c   :  { %482 = vmatprep.mubr.f32.mxu1 %v1259_v38  ;;  %1120 = vmatpush3.bf16.msra.mxu1 %v1117_v40  ;;  %v46_v38 = vld [vmem:[%s1559_s1 + $0x28] sm:$0xff]  ;;  %s1261_s1 = smov 16  }
 0x26d   :  { %v1121_v42 = vpack.c.bf16 %v46_v38, %v45_v41 }
 0x26f   :  { %989 = vmatmul.mubr.msk.f32.gmra.mrb[2].mxu1 %vm51_vm0, %v48_v12  ;;  %1122 = vmatprep.subr.bf16.mxu1 %v1121_v42 }
 0x270   :  { %1124 = vmatpush3.bf16.msra.mxu1 %v1121_v42 }
 0x33e   :  { %v478_v43 = vpop.f32.mrb[0].mxu1 }
 0x33f   :  { %v480_v44 = vpop.f32.mrb[1].mxu1  ;;  %491 = vrot.lane.b32.xlu1 %v478_v43, %s1260_s28  ;;  %1081 = vmatprep.mubr.msk.f32.mxu1 %vm293_vm1, %v478_v43 }
 0x342   :  { %v484_v45 = vpop.f32.mrb[2].mxu1 }
 0x343   :  { %493 = vrot.lane.b32.xlu0 %v484_v45, %s1260_s28  ;;  %495 = vrot.lane.b32.xlu1 %v478_v43, %s1258_s27  ;;  %v486_v46 = vpop.f32.mrb[3].mxu1 }
 0x344   :  { %1082 = vmatmul.mubr.msk.f32.vlgmr.msra.gmra.mrb[4].mxu1 %vm293_vm1, %v484_v45 }
 0x347   :  { %497 = vrot.lane.b32.xlu0 %v484_v45, %s1258_s27  ;;  %499 = vrot.lane.b32.xlu1 %v478_v43, %s1257_s0 }
 0x34b   :  { %501 = vrot.lane.b32.xlu0 %v484_v45, %s1257_s0  ;;  %505 = vrot.lane.b32.xlu1 %v480_v44, %s1260_s28 }
 0x34f   :  { %507 = vrot.lane.b32.xlu0 %v486_v46, %s1260_s28  ;;  %509 = vrot.lane.b32.xlu1 %v480_v44, %s1258_s27 }
 0x353   :  { %511 = vrot.lane.b32.xlu0 %v486_v46, %s1258_s27  ;;  %513 = vrot.lane.b32.xlu1 %v480_v44, %s1257_s0 }
 0x357   :  { %515 = vrot.lane.b32.xlu0 %v486_v46, %s1257_s0 }
 0x3b1   :  { %v492_v47 = vpop.permute.xlu1 %491 }
 0x3b2   :  { %1084 = vmatprep.mubr.msk.f32.mxu1 %vm293_vm1, %v492_v47 }
 0x3b5   :  { %v494_v48 = vpop.permute.xlu0 %493  ;;  %v496_v49 = vpop.permute.xlu1 %495 }
 0x3b6   :  { %1085 = vmatmul.mubr.msk.f32.gmra.mrb[6].mxu1 %vm293_vm1, %v494_v48 }
 0x3b7   :  { %1087 = vmatprep.mubr.msk.f32.mxu1 %vm293_vm1, %v496_v49 }
 0x3b9   :  { %v498_v50 = vpop.permute.xlu0 %497  ;;  %v500_v51 = vpop.permute.xlu1 %499 }
 0x3ba   :  { %1088 = vmatmul.mubr.msk.f32.gmra.mrb[8].mxu1 %vm293_vm1, %v498_v50 }
 0x3bb   :  { %1090 = vmatprep.mubr.msk.f32.mxu1 %vm293_vm1, %v500_v51 }
 0x3bd   :  { %v502_v52 = vpop.permute.xlu0 %501  ;;  %v506_v53 = vpop.permute.xlu1 %505 }
 0x3be   :  { %1091 = vmatmul.mubr.msk.f32.gmra.mrb[10].mxu1 %vm293_vm1, %v502_v52 }
 0x3bf   :  { %1093 = vmatprep.mubr.msk.f32.mxu1 %vm293_vm1, %v480_v44 }
 0x3c1   :  { %v508_v54 = vpop.permute.xlu0 %507  ;;  %v510_v55 = vpop.permute.xlu1 %509 }
 0x3c2   :  { %1094 = vmatmul.mubr.msk.f32.gmra.mrb[12].mxu1 %vm293_vm1, %v486_v46 }
 0x3c3   :  { %1096 = vmatprep.mubr.msk.f32.mxu1 %vm293_vm1, %v506_v53 }
 0x3c5   :  { %v512_v56 = vpop.permute.xlu0 %511  ;;  %v514_v57 = vpop.permute.xlu1 %513 }
 0x3c6   :  { %1097 = vmatmul.mubr.msk.f32.gmra.mrb[14].mxu1 %vm293_vm1, %v508_v54 }
 0x3c7   :  { %1099 = vmatprep.mubr.msk.f32.mxu1 %vm293_vm1, %v510_v55 }
 0x3c9   :  { %v516_v58 = vpop.permute.xlu0 %515 }
 0x3ca   :  { %1100 = vmatmul.mubr.msk.f32.gmra.mrb[16].mxu1 %vm293_vm1, %v512_v56 }
 0x3cb   :  { %1102 = vmatprep.mubr.msk.f32.mxu1 %vm293_vm1, %v514_v57 }
 0x3ce   :  { %1103 = vmatmul.mubr.msk.f32.gmra.mrb[18].mxu1 %vm293_vm1, %v516_v58 }
 0x417   :  { %v1083_v59 = vpop.f32.mrb[4].mxu1 }
 0x418   :  { %v619_v60 = vpop.f32.mrb[5].mxu1  ;;  %v1437_v40 = vadd.f32 %v1083_v59, %v990_v61 }
 0x419   :  { %v1439_v41 = vadd.f32 %v990_v61, %v619_v60 }
 0x41a   :  { %v701_v42 = vsel %vm51_vm0, %v1437_v40, -inf }
 0x41b   :  { %v698_v43 = vsel %vm51_vm0, %v1439_v41, -inf }
 0x489   :  { %v1086_v62 = vpop.f32.mrb[6].mxu1 }
 0x48a   :  { %v635_v63 = vadd.f32 %v1086_v62, %v990_v61  ;;  %v629_v0 = vpop.f32.mrb[7].mxu1 }
 0x48b   :  { %v630_v1 = vadd.f32 %v990_v61, %v629_v0 }
 0x48c   :  { %v707_v2 = vsel %vm51_vm0, %v635_v63, -inf }
 0x48d   :  { %708 = vmax.xlane.f32.xlu0 %v707_v2  ;;  %v1089_v3 = vpop.f32.mrb[8].mxu1  ;;  %v704_v4 = vsel %vm51_vm0, %v630_v1, -inf }
 0x48e   :  { %v1400_v5 = vadd.f32 %v1089_v3, %v990_v61  ;;  %v639_v6 = vpop.f32.mrb[9].mxu1  ;;  %705 = vmax.xlane.f32.xlu1 %v704_v4 }
 0x48f   :  { %v640_v7 = vadd.f32 %v990_v61, %v639_v6 }
 0x490   :  { %v713_v8 = vsel %vm51_vm0, %v1400_v5, -inf }
 0x491   :  { %v1092_v9 = vpop.f32.mrb[10].mxu1  ;;  %v710_v10 = vsel %vm51_vm0, %v640_v7, -inf }
 0x492   :  { %v1405_v11 = vadd.f32 %v1092_v9, %v990_v61  ;;  %v649_v12 = vpop.f32.mrb[11].mxu1  ;;  %711 = vmax.xlane.f32.xlu0 %v710_v10  ;;  %714 = vmax.xlane.f32.xlu1 %v713_v8 }
 0x493   :  { %v650_v13 = vadd.f32 %v990_v61, %v649_v12 }
 0x494   :  { %v719_v14 = vsel %vm51_vm0, %v1405_v11, -inf }
 0x495   :  { %v1095_v15 = vpop.f32.mrb[12].mxu1  ;;  %v716_v16 = vsel %vm51_vm0, %v650_v13, -inf }
 0x496   :  { %v1410_v17 = vadd.f32 %v1095_v15, %v990_v61  ;;  %v659_v18 = vpop.f32.mrb[13].mxu1  ;;  %717 = vmax.xlane.f32.xlu0 %v716_v16  ;;  %720 = vmax.xlane.f32.xlu1 %v719_v14 }
 0x497   :  { %v660_v19 = vadd.f32 %v990_v61, %v659_v18 }
 0x498   :  { %v725_v20 = vsel %vm51_vm0, %v1410_v17, -inf }
 0x499   :  { %v1098_v21 = vpop.f32.mrb[14].mxu1  ;;  %v722_v22 = vsel %vm51_vm0, %v660_v19, -inf }
 0x49a   :  { %v1415_v23 = vadd.f32 %v1098_v21, %v990_v61  ;;  %v669_v24 = vpop.f32.mrb[15].mxu1  ;;  %723 = vmax.xlane.f32.xlu0 %v722_v22  ;;  %726 = vmax.xlane.f32.xlu1 %v725_v20 }
 0x49b   :  { %v1417_v25 = vadd.f32 %v990_v61, %v669_v24 }
 0x49c   :  { %v731_v26 = vsel %vm51_vm0, %v1415_v23, -inf }
 0x49d   :  { %v1101_v27 = vpop.f32.mrb[16].mxu1  ;;  %v728_v28 = vsel %vm51_vm0, %v1417_v25, -inf }
 0x49e   :  { %v1423_v29 = vadd.f32 %v1101_v27, %v990_v61  ;;  %v679_v30 = vpop.f32.mrb[17].mxu1  ;;  %729 = vmax.xlane.f32.xlu0 %v728_v28  ;;  %732 = vmax.xlane.f32.xlu1 %v731_v26 }
 0x49f   :  { %v1425_v31 = vadd.f32 %v990_v61, %v679_v30 }
 0x4a0   :  { %v737_v32 = vsel %vm51_vm0, %v1423_v29, -inf }
 0x4a1   :  { %v1104_v33 = vpop.f32.mrb[18].mxu1  ;;  %v734_v34 = vsel %vm51_vm0, %v1425_v31, -inf }
 0x4a2   :  { %v1431_v35 = vadd.f32 %v1104_v33, %v990_v61  ;;  %v689_v36 = vpop.f32.mrb[19].mxu1  ;;  %735 = vmax.xlane.f32.xlu0 %v734_v34  ;;  %738 = vmax.xlane.f32.xlu1 %v737_v32 }
 0x4a3   :  { %v1433_v37 = vadd.f32 %v990_v61, %v689_v36 }
 0x4a4   :  { %v743_v39 = vsel %vm51_vm0, %v1431_v35, -inf }
 0x4a5   :  { %v740_v38 = vsel %vm51_vm0, %v1433_v37, -inf }
 0x4a6   :  { %741 = vmax.xlane.f32.xlu0 %v740_v38  ;;  %744 = vmax.xlane.f32.xlu1 %v743_v39 }
 0x4aa   :  { %702 = vmax.xlane.f32.xlu1 %v701_v42  ;;  %699 = vmax.xlane.f32.xlu0 %v698_v43 }
 0x51a   :  { %v709_v44 = vpop.xlane.xlu0 %708 }
 0x51b   :  { %v1447_v45 = vsub.f32 %v635_v63, %v709_v44  ;;  %v706_v46 = vpop.xlane.xlu1 %705 }
 0x51c   :  { %v1449_v47 = vsub.f32 %v630_v1, %v706_v46 }
 0x51d   :  { %v768_v48 = vmul.f32 1.442695, %v1447_v45 }
 0x51e   :  { %v766_v49 = vmul.f32 1.442695, %v1449_v47 }
 0x51f   :  { %1166 = vpow2.f32 %v768_v48  ;;  %v712_v50 = vpop.xlane.xlu0 %711  ;;  %v715_v51 = vpop.xlane.xlu1 %714 }
 0x520   :  { %1168 = vpow2.f32 %v766_v49  ;;  %v1453_v52 = vsub.f32 %v640_v7, %v712_v50  ;;  %v1456_v53 = vsub.f32 %v1400_v5, %v715_v51 }
 0x522   :  { %v770_v54 = vmul.f32 1.442695, %v1453_v52  ;;  %v772_v55 = vmul.f32 1.442695, %v1456_v53 }
 0x523   :  { %v718_v56 = vpop.xlane.xlu0 %717  ;;  %v721_v57 = vpop.xlane.xlu1 %720 }
 0x524   :  { %1170 = vpow2.f32 %v770_v54  ;;  %v1460_v58 = vsub.f32 %v650_v13, %v718_v56  ;;  %v1463_v59 = vsub.f32 %v1405_v11, %v721_v57 }
 0x525   :  { %1172 = vpow2.f32 %v772_v55 }
 0x526   :  { %v774_v60 = vmul.f32 1.442695, %v1460_v58  ;;  %v776_v61 = vmul.f32 1.442695, %v1463_v59 }
 0x527   :  { %v724_v62 = vpop.xlane.xlu0 %723  ;;  %v727_v63 = vpop.xlane.xlu1 %726 }
 0x528   :  { %1174 = vpow2.f32 %v774_v60  ;;  %v1467_v0 = vsub.f32 %v660_v19, %v724_v62  ;;  %v1470_v1 = vsub.f32 %v1410_v17, %v727_v63 }
 0x529   :  { %v1167_v2 = vpop.eup %1166  ;;  %1176 = vpow2.f32 %v776_v61 }
 0x52a   :  { %v1169_v3 = vpop.eup %1168  ;;  %v778_v4 = vmul.f32 1.442695, %v1467_v0  ;;  %v780_v5 = vmul.f32 1.442695, %v1470_v1  ;;  %v803_v6 = vsel %vm51_vm0, %v1167_v2, 0.0 }
 0x52b   :  { %v730_v7 = vpop.xlane.xlu0 %729  ;;  %804 = vadd.xlane.f32.xlu1 %v803_v6  ;;  %v733_v8 = vpop.xlane.xlu1 %732  ;;  %v800_v9 = vsel %vm51_vm0, %v1169_v3, 0.0 }
 0x52c   :  { %1178 = vpow2.f32 %v778_v4  ;;  %v1477_v10 = vsub.f32 %v1417_v25, %v730_v7  ;;  %v1480_v11 = vsub.f32 %v1415_v23, %v733_v8  ;;  %801 = vadd.xlane.f32.xlu0 %v800_v9 }
 0x52d   :  { %1180 = vpow2.f32 %v780_v5 }
 0x52e   :  { %v1171_v12 = vpop.eup %1170  ;;  %v782_v13 = vmul.f32 1.442695, %v1477_v10  ;;  %v784_v14 = vmul.f32 1.442695, %v1480_v11 }
 0x52f   :  { %v1173_v15 = vpop.eup %1172  ;;  %v736_v16 = vpop.xlane.xlu0 %735  ;;  %v806_v18 = vsel %vm51_vm0, %v1171_v12, 0.0 }
 0x530   :  { %v739_v17 = vpop.xlane.xlu1 %738  ;;  %1182 = vpow2.f32 %v782_v13  ;;  %v1486_v19 = vsub.f32 %v1425_v31, %v736_v16  ;;  %v809_v21 = vsel %vm51_vm0, %v1173_v15, 0.0  ;;  %807 = vadd.xlane.f32.xlu0 %v806_v18 }
 0x531   :  { %v1489_v20 = vsub.f32 %v1423_v29, %v739_v17  ;;  %1184 = vpow2.f32 %v784_v14  ;;  %810 = vadd.xlane.f32.xlu1 %v809_v21 }
 0x532   :  { %v1175_v22 = vpop.eup %1174  ;;  %v786_v23 = vmul.f32 1.442695, %v1486_v19 }
 0x533   :  { %v788_v24 = vmul.f32 1.442695, %v1489_v20  ;;  %v1177_v25 = vpop.eup %1176  ;;  %v742_v26 = vpop.xlane.xlu0 %741  ;;  %v812_v28 = vsel %vm51_vm0, %v1175_v22, 0.0 }
 0x534   :  { %v745_v27 = vpop.xlane.xlu1 %744  ;;  %1186 = vpow2.f32 %v786_v23  ;;  %v1496_v30 = vsub.f32 %v1433_v37, %v742_v26  ;;  %v815_v31 = vsel %vm51_vm0, %v1177_v25, 0.0  ;;  %813 = vadd.xlane.f32.xlu0 %v812_v28 }
 0x535   :  { %v1499_v29 = vsub.f32 %v1431_v35, %v745_v27  ;;  %1188 = vpow2.f32 %v788_v24  ;;  %816 = vadd.xlane.f32.xlu1 %v815_v31 }
 0x536   :  { %v1179_v32 = vpop.eup %1178  ;;  %v790_v33 = vmul.f32 1.442695, %v1496_v30 }
 0x537   :  { %v792_v34 = vmul.f32 1.442695, %v1499_v29  ;;  %v1181_v36 = vpop.eup %1180  ;;  %v700_v38 = vpop.xlane.xlu0 %699  ;;  %v818_v42 = vsel %vm51_vm0, %v1179_v32, 0.0 }
 0x538   :  { %v703_v39 = vpop.xlane.xlu1 %702  ;;  %1190 = vpow2.f32 %v790_v33  ;;  %v1509_v35 = vsub.f32 %v1439_v41, %v700_v38  ;;  %v821_v43 = vsel %vm51_vm0, %v1181_v36, 0.0  ;;  %819 = vadd.xlane.f32.xlu0 %v818_v42 }
 0x539   :  { %v1506_v37 = vsub.f32 %v1437_v40, %v703_v39  ;;  %1192 = vpow2.f32 %v792_v34  ;;  %822 = vadd.xlane.f32.xlu1 %v821_v43 }
 0x53a   :  { %v1183_v44 = vpop.eup %1182  ;;  %v762_v48 = vmul.f32 1.442695, %v1509_v35 }
 0x53b   :  { %v764_v46 = vmul.f32 1.442695, %v1506_v37  ;;  %v1185_v49 = vpop.eup %1184  ;;  %v824_v50 = vsel %vm51_vm0, %v1183_v44, 0.0 }
 0x53c   :  { %v827_v40 = vsel %vm51_vm0, %v1185_v49, 0.0  ;;  %825 = vadd.xlane.f32.xlu0 %v824_v50 }
 0x53d   :  { %1194 = vpow2.f32 %v764_v46  ;;  %828 = vadd.xlane.f32.xlu1 %v827_v40 }
 0x53e   :  { %1196 = vpow2.f32 %v762_v48  ;;  %v1187_v41 = vpop.eup %1186 }
 0x53f   :  { %v1189_v51 = vpop.eup %1188  ;;  %v830_v54 = vsel %vm51_vm0, %v1187_v41, 0.0 }
 0x540   :  { %v833_v55 = vsel %vm51_vm0, %v1189_v51, 0.0  ;;  %831 = vadd.xlane.f32.xlu0 %v830_v54 }
 0x541   :  { %834 = vadd.xlane.f32.xlu1 %v833_v55 }
 0x542   :  { %v1191_v56 = vpop.eup %1190 }
 0x543   :  { %v1193_v57 = vpop.eup %1192  ;;  %v836_v60 = vsel %vm51_vm0, %v1191_v56, 0.0 }
 0x544   :  { %v839_v61 = vsel %vm51_vm0, %v1193_v57, 0.0  ;;  %837 = vadd.xlane.f32.xlu0 %v836_v60 }
 0x545   :  { %840 = vadd.xlane.f32.xlu1 %v839_v61 }
 0x547   :  { %v1195_v62 = vpop.eup %1194 }
 0x548   :  { %v1197_v63 = vpop.eup %1196  ;;  %v797_v2 = vsel %vm51_vm0, %v1195_v62, 0.0 }
 0x549   :  { %v794_v3 = vsel %vm51_vm0, %v1197_v63, 0.0  ;;  %798 = vadd.xlane.f32.xlu1 %v797_v2 }
 0x54a   :  { %795 = vadd.xlane.f32.xlu0 %v794_v3 }
 0x5b8   :  { %v805_v4 = vpop.xlane.xlu1 %804 }
 0x5b9   :  { %1198 = vlog2.f32 %v805_v4  ;;  %v802_v5 = vpop.xlane.xlu0 %801 }
 0x5ba   :  { %1200 = vlog2.f32 %v802_v5 }
 0x5bd   :  { %v808_v6 = vpop.xlane.xlu0 %807 }
 0x5be   :  { %v811_v7 = vpop.xlane.xlu1 %810  ;;  %1202 = vlog2.f32 %v808_v6 }
 0x5bf   :  { %1204 = vlog2.f32 %v811_v7 }
 0x5c1   :  { %v814_v8 = vpop.xlane.xlu0 %813 }
 0x5c2   :  { %v817_v9 = vpop.xlane.xlu1 %816  ;;  %1206 = vlog2.f32 %v814_v8 }
 0x5c3   :  { %v1199_v12 = vpop.eup %1198  ;;  %1208 = vlog2.f32 %v817_v9 }
 0x5c4   :  { %v1201_v13 = vpop.eup %1200  ;;  %v849_v14 = vmul.f32 0.6931472, %v1199_v12 }
 0x5c5   :  { %v847_v15 = vmul.f32 0.6931472, %v1201_v13  ;;  %v820_v16 = vpop.xlane.xlu0 %819 }
 0x5c6   :  { %v823_v17 = vpop.xlane.xlu1 %822  ;;  %1210 = vlog2.f32 %v820_v16  ;;  %v877_v18 = vsub.f32 %v1447_v45, %v849_v14 }
 0x5c7   :  { %1212 = vlog2.f32 %v823_v17  ;;  %v876_v21 = vsub.f32 %v1449_v47, %v847_v15 }
 0x5c8   :  { %v1203_v22 = vpop.eup %1202  ;;  %894 = vrot.lane.b32.xlu1 %v877_v18, %s1261_s1 }
 0x5c9   :  { %v1205_v23 = vpop.eup %1204  ;;  %v851_v24 = vmul.f32 0.6931472, %v1203_v22  ;;  %892 = vrot.lane.b32.xlu0 %v876_v21, %s1261_s1  ;;  %v826_v25 = vpop.xlane.xlu0 %825 }
 0x5ca   :  { %v853_v26 = vmul.f32 0.6931472, %v1205_v23  ;;  %v829_v27 = vpop.xlane.xlu1 %828  ;;  %1214 = vlog2.f32 %v826_v25 }
 0x5cb   :  { %1216 = vlog2.f32 %v829_v27  ;;  %v878_v28 = vsub.f32 %v1453_v52, %v851_v24 }
 0x5cc   :  { %v1207_v31 = vpop.eup %1206  ;;  %v879_v32 = vsub.f32 %v1456_v53, %v853_v26 }
 0x5cd   :  { %v1209_v45 = vpop.eup %1208  ;;  %v855_v33 = vmul.f32 0.6931472, %v1207_v31  ;;  %900 = vrot.lane.b32.xlu1 %v878_v28, %s1257_s0  ;;  %v832_v47 = vpop.xlane.xlu0 %831 }
 0x5ce   :  { %v857_v34 = vmul.f32 0.6931472, %v1209_v45  ;;  %v835_v36 = vpop.xlane.xlu1 %834  ;;  %902 = vrot.lane.b32.xlu0 %v879_v32, %s1257_s0  ;;  %1218 = vlog2.f32 %v832_v47 }
 0x5cf   :  { %1220 = vlog2.f32 %v835_v36  ;;  %v880_v39 = vsub.f32 %v1460_v58, %v855_v33 }
 0x5d0   :  { %v1211_v38 = vpop.eup %1210  ;;  %v881_v42 = vsub.f32 %v1463_v59, %v857_v34 }
 0x5d1   :  { %v1213_v52 = vpop.eup %1212  ;;  %v859_v43 = vmul.f32 0.6931472, %v1211_v38  ;;  %908 = vrot.lane.b32.xlu1 %v880_v39, %s1262_s17  ;;  %v838_v53 = vpop.xlane.xlu0 %837 }
 0x5d2   :  { %v861_v44 = vmul.f32 0.6931472, %v1213_v52  ;;  %v841_v46 = vpop.xlane.xlu1 %840  ;;  %910 = vrot.lane.b32.xlu0 %v881_v42, %s1262_s17  ;;  %1222 = vlog2.f32 %v838_v53 }
 0x5d3   :  { %1224 = vlog2.f32 %v841_v46  ;;  %v882_v48 = vsub.f32 %v1467_v0, %v859_v43 }
 0x5d4   :  { %v1215_v49 = vpop.eup %1214  ;;  %v883_v50 = vsub.f32 %v1470_v1, %v861_v44 }
 0x5d5   :  { %v1217_v40 = vpop.eup %1216  ;;  %v863_v58 = vmul.f32 0.6931472, %v1215_v49  ;;  %916 = vrot.lane.b32.xlu1 %v882_v48, %s1258_s27 }
 0x5d6   :  { %v865_v59 = vmul.f32 0.6931472, %v1217_v40  ;;  %918 = vrot.lane.b32.xlu0 %v883_v50, %s1258_s27  ;;  %v799_v2 = vpop.xlane.xlu1 %798 }
 0x5d7   :  { %v884_v41 = vsub.f32 %v1477_v10, %v863_v58  ;;  %v796_v3 = vpop.xlane.xlu0 %795 }
 0x5d8   :  { %v1219_v51 = vpop.eup %1218  ;;  %v885_v54 = vsub.f32 %v1480_v11, %v865_v59  ;;  %1226 = vlog2.f32 %v796_v3 }
 0x5d9   :  { %v1221_v55 = vpop.eup %1220  ;;  %v867_v56 = vmul.f32 0.6931472, %v1219_v51  ;;  %924 = vrot.lane.b32.xlu1 %v884_v41, %s1263_s18  ;;  %1228 = vlog2.f32 %v799_v2 }
 0x5da   :  { %v869_v0 = vmul.f32 0.6931472, %v1221_v55  ;;  %926 = vrot.lane.b32.xlu0 %v885_v54, %s1263_s18 }
 0x5db   :  { %v886_v1 = vsub.f32 %v1486_v19, %v867_v56 }
 0x5dc   :  { %v1223_v57 = vpop.eup %1222  ;;  %v887_v60 = vsub.f32 %v1489_v20, %v869_v0 }
 0x5dd   :  { %v1225_v61 = vpop.eup %1224  ;;  %v871_v62 = vmul.f32 0.6931472, %v1223_v57  ;;  %932 = vrot.lane.b32.xlu1 %v886_v1, %s1260_s28 }
 0x5de   :  { %v873_v63 = vmul.f32 0.6931472, %v1225_v61  ;;  %934 = vrot.lane.b32.xlu0 %v887_v60, %s1260_s28 }
 0x5df   :  { %v888_v10 = vsub.f32 %v1496_v30, %v871_v62 }
 0x5e0   :  { %v889_v11 = vsub.f32 %v1499_v29, %v873_v63 }
 0x5e1   :  { %940 = vrot.lane.b32.xlu1 %v888_v10, %s1264_s19 }
 0x5e2   :  { %942 = vrot.lane.b32.xlu0 %v889_v11, %s1264_s19  ;;  %v1227_v8 = vpop.eup %1226 }
 0x5e3   :  { %v1229_v9 = vpop.eup %1228  ;;  %v843_v13 = vmul.f32 0.6931472, %v1227_v8 }
 0x5e4   :  { %v845_v14 = vmul.f32 0.6931472, %v1229_v9 }
 0x5e5   :  { %v874_v15 = vsub.f32 %v1509_v35, %v843_v13 }
 0x5e6   :  { %v875_v17 = vsub.f32 %v1506_v37, %v845_v14 }
 0x63a   :  { %v895_v19 = vpop.permute.xlu1 %894 }
 0x63b   :  { %v893_v4 = vpop.permute.xlu0 %892  ;;  %v947_v21 = vsel %vm51_vm0, %v875_v17, %v895_v19 }
 0x63c   :  { %v946_v18 = vsel %vm51_vm0, %v874_v15, %v893_v4 }
 0x63f   :  { %v901_v20 = vpop.permute.xlu1 %900 }
 0x640   :  { %v903_v5 = vpop.permute.xlu0 %902  ;;  %v948_v22 = vsel %vm293_vm1, %v946_v18, %v901_v20 }
 0x641   :  { %v949_v24 = vsel %vm293_vm1, %v947_v21, %v903_v5 }
 0x643   :  { %v909_v6 = vpop.permute.xlu1 %908 }
 0x644   :  { %v911_v7 = vpop.permute.xlu0 %910  ;;  %v951_v25 = vsel %vm950_vm4, %v948_v22, %v909_v6 }
 0x645   :  { %v952_v27 = vsel %vm950_vm4, %v949_v24, %v911_v7 }
 0x647   :  { %v917_v12 = vpop.permute.xlu1 %916 }
 0x648   :  { %v919_v30 = vpop.permute.xlu0 %918  ;;  %v953_v28 = vsel %vm296_vm2, %v951_v25, %v917_v12 }
 0x649   :  { %v954_v35 = vsel %vm296_vm2, %v952_v27, %v919_v30 }
 0x64b   :  { %v925_v29 = vpop.permute.xlu1 %924 }
 0x64c   :  { %v927_v16 = vpop.permute.xlu0 %926  ;;  %v956_v37 = vsel %vm955_vm5, %v953_v28, %v925_v29 }
 0x64d   :  { %v957_v31 = vsel %vm955_vm5, %v954_v35, %v927_v16 }
 0x64f   :  { %v933_v23 = vpop.permute.xlu1 %932 }
 0x650   :  { %v935_v26 = vpop.permute.xlu0 %934  ;;  %v958_v32 = vsel %vm299_vm3, %v956_v37, %v933_v23 }
 0x651   :  { %v959_v33 = vsel %vm299_vm3, %v957_v31, %v935_v26 }
 0x653   :  { %v941_v45 = vpop.permute.xlu1 %940 }
 0x654   :  { %v961_v47 = vsel %vm960_vm6, %v958_v32, %v941_v45  ;;  %v943_v34 = vpop.permute.xlu0 %942 }
 0x655   :  { %963 = vst [vmem:[%s1560_s2] sm:$0xff] %v961_v47  ;;  %v962_v36 = vsel %vm960_vm6, %v959_v33, %v943_v34 }
 0x656   :  { %964 = vst [vmem:[%s1560_s2 + $0x8] sm:$0xff] %v962_v36 }
 0x657   :  { %969 = vsyncpa [#allocation3], 1 }

</bundles_post_ra>
